<compile_context>
chip_gen: v7x
topology: tpu7x:2x2x1
jax: 0.10.0
libtpu: 0.0.40
codegen_flags: <defaults>
</compile_context>

<pallas_src>
import math

import jax
import jax.numpy as jnp
from jax.experimental import pallas as pl
from jax.experimental.pallas import tpu as pltpu

# Deterministic Student-t parameters (no learnable params in __init__).
_DF = 3.0      # degrees of freedom (nu)
_LOC = 0.0     # mu
_SCALE = 1.0   # sigma

# Constant (data-independent) part of the log-pdf, computed on host:
#   lgamma((nu+1)/2) - lgamma(nu/2) - 0.5*log(nu*pi) - log(sigma)
_CONST = (
    math.lgamma((_DF + 1.0) / 2.0)
    - math.lgamma(_DF / 2.0)
    - 0.5 * math.log(_DF * math.pi)
    - math.log(_SCALE)
)
_INV_DF = 1.0 / _DF
_HALF_DFP1 = 0.5 * (_DF + 1.0)


def _detect_generation():
    try:
        kind = jax.devices()[0].device_kind.lower()
    except Exception:
        kind = ""
    is_v7 = "7" in kind
    is_v5e = ("v5 lite" in kind) or ("v5e" in kind) or ("v5lite" in kind)
    return is_v7, is_v5e


_IS_V7, _IS_V5E = _detect_generation()

# Per-block byte budget (per buffer):
#   v7x : 4 MiB  -> 16 MiB live double-buffered in+out, under the 32 MiB
#         scoped-VMEM default; at ~3.2 TB/s the ~0.35 us/step overhead drops
#         to ~10% of a block's stream time.
#   v6e : 2 MiB  -> 8 MiB live; per-step overhead already <10%.
#   v5e : 2 MiB  -> must stay under the 16 MiB scoped-VMEM default, and at
#         ~0.8 TB/s HBM a bigger tile buys nothing anyway.
_BLOCK_BYTES = (4 << 20) if _IS_V7 else (2 << 20)

# Candidate lane widths, widest first: wide lane-dense output slabs give long
# unmasked vst / DMA transfers.
_LANE_CANDIDATES = (1024, 512, 256, 128)

# At or below this many elements take the single-block (no-grid) path; above
# it the ~0.35 us/step grid overhead is cheaper than losing DMA/compute
# overlap.
_SMALL_ELEMS = 1 << 17      # 128K elements (512 KiB in f32)


def _studentt_logpdf_kernel(x_ref, o_ref):
    """Elementwise Student-t log-pdf on one VMEM tile (compute in f32)."""
    x = x_ref[...].astype(jnp.float32)
    # loc=0, scale=1 -> z = x.  Multiply by precomputed 1/df so the only
    # transcendental (EUP) op is log1p.
    o_ref[...] = (_CONST - _HALF_DFP1 * jnp.log1p(x * x * _INV_DF)).astype(
        o_ref.dtype
    )


def _round_up(n, m):
    return ((n + m - 1) // m) * m


def _forward(x: jax.Array) -> jax.Array:
    """Student-t log-pdf, elementwise over an arbitrary-shape tensor."""
    orig_shape = x.shape
    orig_dtype = x.dtype
    total = x.size
    itemsize = x.dtype.itemsize

    # ---- small path: one full-array block, no grid --------------------------
    if total <= _SMALL_ELEMS:
        lanes = 128
        rows = pl.cdiv(total, lanes)
        padded = rows * lanes
        flat = x.reshape(-1)
        if padded != total:
            flat = jnp.pad(flat, (0, padded - total))
        out2d = pl.pallas_call(
            _studentt_logpdf_kernel,
            out_shape=jax.ShapeDtypeStruct((rows, lanes), orig_dtype),
            input_output_aliases={0: 0},
        )(flat.reshape(rows, lanes))
        return out2d.reshape(-1)[:total].reshape(orig_shape)

    # ---- large path: lane-dense pipelined grid, no whole-array padding ------
    lanes = next((l for l in _LANE_CANDIDATES if total % l == 0), None)
    pad_tail = 0
    if lanes is None:
        # Rare: total not a multiple of 128.  Pad only to the next multiple of
        # 128 (<=127 extra elements) and slice the tail off afterwards.
        lanes = 128
        pad_tail = _round_up(total, lanes) - total

    flat = x.reshape(-1)
    if pad_tail:
        flat = jnp.pad(flat, (0, pad_tail))
    rows = (total + pad_tail) // lanes

    # Block row count: aim at the per-generation byte budget, but keep roughly
    # >=8 grid steps so the pipeline (and v7x's two TensorCores, via the
    # "parallel" axis) stays busy on medium inputs.  Always a multiple of 8;
    # the partial last tile (rows % tile_rows) is masked by Pallas.
    tile_rows_budget = max(8, _BLOCK_BYTES // (lanes * itemsize))
    tile_rows = min(tile_rows_budget, _round_up(pl.cdiv(rows, 8), 8))
    grid = (pl.cdiv(rows, tile_rows),)

    cost = pl.CostEstimate(
        flops=5 * total,
        transcendentals=total,
        bytes_accessed=2 * total * itemsize,
    )

    out2d = pl.pallas_call(
        _studentt_logpdf_kernel,
        out_shape=jax.ShapeDtypeStruct((rows, lanes), orig_dtype),
        grid=grid,
        in_specs=[pl.BlockSpec((tile_rows, lanes), lambda i: (i, 0))],
        out_specs=pl.BlockSpec((tile_rows, lanes), lambda i: (i, 0)),
        compiler_params=pltpu.CompilerParams(
            dimension_semantics=("parallel",)
        ),
        cost_estimate=cost,
    )(flat.reshape(rows, lanes))

    out_flat = out2d.reshape(-1)
    if pad_tail:
        out_flat = out_flat[:total]
    return out_flat.reshape(orig_shape)


# Jitted entry point: the flatten/reshape around the pallas_call becomes a
# layout bitcast instead of a materialized HBM copy.
studentt_logpdf = jax.jit(_forward)


def _ref_logpdf(x):
    z = (x.astype(jnp.float32) - _LOC) / _SCALE
    return (_CONST - _HALF_DFP1 * jnp.log1p(z * z / _DF)).astype(x.dtype)


if __name__ == "__main__":
    key = jax.random.PRNGKey(0)

    # 1) Small NCHW input consistent with a conv-style pipeline: [2, 4, 16, 16]
    x_small = jax.random.normal(key, (2, 4, 16, 16), dtype=jnp.float32)
    out_small = jax.block_until_ready(studentt_logpdf(x_small))
    assert out_small.shape == x_small.shape and out_small.dtype == x_small.dtype
    assert jnp.allclose(out_small, _ref_logpdf(x_small), atol=1e-5, rtol=1e-5)

    # 2) Awkward (non-multiple-of-128) shape to exercise the small padding path.
    k1, k2 = jax.random.split(key)
    x_odd = jax.random.normal(k1, (3, 5, 7, 11), dtype=jnp.float32)
    out_odd = jax.block_until_ready(studentt_logpdf(x_odd))
    assert out_odd.shape == x_odd.shape
    assert jnp.allclose(out_odd, _ref_logpdf(x_odd), atol=1e-5, rtol=1e-5)

    # 3) Larger input to exercise the pipelined grid path (no padding, partial
    #    last tile handled by Pallas masking).
    x_big = jax.random.normal(k2, (2, 8, 512, 256), dtype=jnp.float32)
    out_big = jax.block_until_ready(studentt_logpdf(x_big))
    assert out_big.shape == x_big.shape
    assert jnp.allclose(out_big, _ref_logpdf(x_big), atol=1e-5, rtol=1e-5)

    # 4) Medium input that is not a multiple of the block size (exercises the
    #    masked partial last tile and the >=8-step tile heuristic).
    x_med = jax.random.normal(k1, (3, 7, 96, 128), dtype=jnp.float32)
    out_med = jax.block_until_ready(studentt_logpdf(x_med))
    assert out_med.shape == x_med.shape
    assert jnp.allclose(out_med, _ref_logpdf(x_med), atol=1e-5, rtol=1e-5)

    print("KERNEL_OK")
</pallas_src>

<mosaic_0001>
module attributes {stable_mosaic.version = 11 : i64} {
  func.func @_studentt_logpdf_kernel(%arg0: memref<16x128xf32, #tpu.memory_space<vmem>>, %arg1: memref<16x128xf32, #tpu.memory_space<vmem>>) attributes {dimension_semantics = [], scalar_prefetch = 0 : i64, scratch_operands = 0 : i64, tpu.core_type = #tpu.core_type<tc>} {
    %c0 = arith.constant 0 : index
    %c0_0 = arith.constant 0 : index
    %0 = vector.load %arg0[%c0, %c0_0] : memref<16x128xf32, #tpu.memory_space<vmem>>, vector<16x128xf32>
    %1 = arith.mulf %0, %0 : vector<16x128xf32>
    %cst = arith.constant 0.333333343 : f32
    %2 = vector.broadcast %cst : f32 to vector<16x128xf32>
    %3 = arith.mulf %1, %2 : vector<16x128xf32>
    %4 = math.log1p %3 : vector<16x128xf32>
    %cst_1 = arith.constant 2.000000e+00 : f32
    %5 = vector.broadcast %cst_1 : f32 to vector<16x128xf32>
    %6 = arith.mulf %5, %4 : vector<16x128xf32>
    %cst_2 = arith.constant -1.00088882 : f32
    %7 = vector.broadcast %cst_2 : f32 to vector<16x128xf32>
    %8 = arith.subf %7, %6 : vector<16x128xf32>
    %c0_3 = arith.constant 0 : index
    %c0_4 = arith.constant 0 : index
    %9 = vector.load %arg1[%c0_3, %c0_4] : memref<16x128xf32, #tpu.memory_space<vmem>>, vector<16x128xf32>
    tpu.vector_store %arg1[%c0_3, %c0_4], %8 {strides = array<i32>} : memref<16x128xf32, #tpu.memory_space<vmem>>, vector<16x128xf32>,
    return
  }
}

</mosaic_0001>

<bundles_post_ra>
// kernel: _forward.1
= control target key start
LH: loop header
LB: loop body
LE: loop exit
PB: predicated region body
PF: predicated region fallthrough
CT: control target
= control target key end

     0   :  { %s68_s0 = inlined_call_operand.vmem [shape: f32[16,128], index: 0, kind: input, shape index: {}, may-alias: {0,1}]   ;;  %s69_s1 = inlined_call_operand.vmem [shape: f32[16,128], index: 1, kind: output, shape index: {}, may-alias: {0,1}]  }
   0x1   :  { %v8_v0 = vld [vmem:[%s68_s0] sm:$0xff]  ;;  %v9_v1 = vld [vmem:[%s68_s0 + $0x8] sm:$0xff] }
   0x2   :  { %v10_v2 = vmul.f32 %v8_v0, %v8_v0  ;;  %v11_v3 = vmul.f32 %v9_v1, %v9_v1 }
   0x4   :  { %v12_v4 = vmul.f32 0.33333334, %v10_v2  ;;  %v13_v5 = vmul.f32 0.33333334, %v11_v3 }
   0x6   :  { %v14_v6 = vadd.f32 1.0, %v12_v4  ;;  %v23_v7 = vadd.f32 1.0, %v13_v5  ;;  %v17_v8 = vmul.f32 -0.5, %v12_v4  ;;  %v26_v9 = vmul.f32 -0.5, %v13_v5 }
   0x7   :  { %v20_v11 = vand.u32 2147483647, %v12_v4  ;;  %v29_v13 = vand.u32 2147483647, %v13_v5 }
   0x8   :  { %42 = vlog2.f32 %v14_v6  ;;  %v18_v10 = vadd.f32 1.0, %v17_v8  ;;  %v27_v12 = vadd.f32 1.0, %v26_v9 }
   0x9   :  { %44 = vlog2.f32 %v23_v7  ;;  %vm21_vm0 = vcmp.lt.f32.partialorder %v20_v11, 0.0004427343  ;;  %vm30_vm1 = vcmp.lt.f32.partialorder %v29_v13, 0.0004427343 }
   0xa   :  { %v19_v14 = vmul.f32 %v18_v10, %v12_v4  ;;  %v28_v16 = vmul.f32 %v27_v12, %v13_v5 }
  0x12   :  { %v43_v15 = vpop.eup %42 }
  0x13   :  { %v45_v17 = vpop.eup %44  ;;  %v16_v18 = vmul.f32 0.6931472, %v43_v15 }
  0x14   :  { %v25_v19 = vmul.f32 0.6931472, %v45_v17 }
  0x15   :  { %v22_v20 = vsel %vm21_vm0, %v19_v14, %v16_v18 }
  0x16   :  { %v32_v21 = vmul.f32 2.0, %v22_v20  ;;  %v31_v22 = vsel %vm30_vm1, %v28_v16, %v25_v19 }
  0x17   :  { %v33_v23 = vmul.f32 2.0, %v31_v22 }
  0x18   :  { %v34_v24 = vsub.f32 -1.0008888, %v32_v21 }
  0x19   :  { %v35_v25 = vsub.f32 -1.0008888, %v33_v23 }
  0x1a   :  { %36 = vst [vmem:[%s69_s1] sm:$0xff] %v34_v24 }
  0x1b   :  { %37 = vst [vmem:[%s69_s1 + $0x8] sm:$0xff] %v35_v25 }

</bundles_post_ra>
